<compile_context>
chip_gen: v5e
topology: v5e:2x2
jax: 0.10.0
libtpu: 0.0.40
codegen_flags: <defaults>
</compile_context>

<pallas_src>
import math

import jax
import jax.numpy as jnp
from jax import lax
from jax.experimental import pallas as pl
from jax.experimental.pallas import tpu as pltpu


_INV_SQRT2 = 1.0 / math.sqrt(2.0)


def _exact_gelu(x):
    # torch.nn.GELU() default (exact): 0.5 * x * (1 + erf(x / sqrt(2)))
    return 0.5 * x * (1.0 + lax.erf(x * _INV_SQRT2))


def _mlp_kernel(x_ref, wfc_ref, bfc_ref, wproj_ref, bproj_ref, o_ref, acc_ref):
    j = pl.program_id(1)

    @pl.when(j == 0)
    def _init():
        # Seed the f32 accumulator with the output bias (broadcast over rows),
        # so no extra add is needed at finalize.
        acc_ref[...] = jnp.broadcast_to(
            bproj_ref[...].astype(jnp.float32), acc_ref.shape)

    # c_fc slab: [tm, H] @ [H, ti] -> [tm, ti], f32 accumulation on the MXU.
    h = jnp.dot(x_ref[...], wfc_ref[...], preferred_element_type=jnp.float32)
    h = h + bfc_ref[...].astype(jnp.float32)
    h = _exact_gelu(h)

    # c_proj slab: [tm, ti] @ [ti, H] accumulated into the resident [tm, H].
    acc_ref[...] += jnp.dot(h.astype(wproj_ref.dtype), wproj_ref[...],
                            preferred_element_type=jnp.float32)

    @pl.when(j == pl.num_programs(1) - 1)
    def _finalize():
        o_ref[...] = acc_ref[...].astype(o_ref.dtype)


def _round_up(x, m):
    return ((x + m - 1) // m) * m


def _pick_tile(dim, want, align):
    """Largest multiple of `align` <= want that divides dim (or full dim)."""
    if dim <= align or dim % align != 0:
        return dim
    t = max(align, (min(want, dim) // align) * align)
    while dim % t != 0:
        t -= align
    return t


def qwen_vl_mlp(x, w_fc, b_fc, w_proj, b_proj, *,
                tile_m=256, tile_i=512, compute_dtype=None):
    """Fused QwenVLMLP forward: c_proj(gelu(c_fc(x))).

    x:      [S, H]
    w_fc:   [H, I]   (transpose of torch c_fc.weight)
    b_fc:   [I]
    w_proj: [I, H]   (transpose of torch c_proj.weight)
    b_proj: [H]
    """
    S, H = x.shape
    I = w_fc.shape[1]

    if compute_dtype is not None:
        x = x.astype(compute_dtype)
        w_fc = w_fc.astype(compute_dtype)
        w_proj = w_proj.astype(compute_dtype)
    out_dtype = x.dtype

    # Tile sizes: big M tiles to saturate the MXU; stream the intermediate dim.
    tm = min(tile_m, _round_up(S, 8))
    ti = _pick_tile(I, tile_i, 128)

    # Pad the sequence dim so arbitrary vision-token counts are accepted.
    S_pad = _round_up(S, tm)
    if S_pad != S:
        x = jnp.pad(x, ((0, S_pad - S), (0, 0)))

    b_fc_row = b_fc.reshape(1, I)
    b_proj_row = b_proj.reshape(1, H)

    grid = (S_pad // tm, I // ti)

    # VMEM budget: double-buffered tiles + f32 accumulator, with margin.
    isz = jnp.dtype(x.dtype).itemsize
    need = (2 * isz * (tm * H + H * ti + ti + ti * H + H)
            + 2 * jnp.dtype(out_dtype).itemsize * tm * H
            + 4 * tm * H)
    vmem_limit = int(min(max(2 * need, 32 * 1024 * 1024), 64 * 1024 * 1024))

    cost = pl.CostEstimate(
        flops=4 * S_pad * H * I,            # two matmuls
        transcendentals=S_pad * I,          # erf inside GELU
        bytes_accessed=(x.size + w_fc.size + w_proj.size) * isz
        + (b_fc.size + b_proj.size) * jnp.dtype(b_fc.dtype).itemsize
        + S_pad * H * jnp.dtype(out_dtype).itemsize,
    )

    out = pl.pallas_call(
        _mlp_kernel,
        out_shape=jax.ShapeDtypeStruct((S_pad, H), out_dtype),
        grid_spec=pltpu.PrefetchScalarGridSpec(
            num_scalar_prefetch=0,
            grid=grid,
            in_specs=[
                pl.BlockSpec((tm, H), lambda i, j: (i, 0)),   # x rows (reused over j)
                pl.BlockSpec((H, ti), lambda i, j: (0, j)),   # W_fc column slab
                pl.BlockSpec((1, ti), lambda i, j: (0, j)),   # b_fc slab
                pl.BlockSpec((ti, H), lambda i, j: (j, 0)),   # W_proj row slab
                pl.BlockSpec((1, H), lambda i, j: (0, 0)),    # b_proj
            ],
            out_specs=pl.BlockSpec((tm, H), lambda i, j: (i, 0)),
            scratch_shapes=[pltpu.VMEM((tm, H), jnp.float32)],
        ),
        compiler_params=pltpu.CompilerParams(
            dimension_semantics=("parallel", "arbitrary"),
            vmem_limit_bytes=vmem_limit),
        cost_estimate=cost,
    )(x, w_fc, b_fc_row, w_proj, b_proj_row)

    return out[:S] if S_pad != S else out


def qwen_vl_mlp_ref(x, w_fc, b_fc, w_proj, b_proj):
    x = x.astype(jnp.float32)
    h = x @ w_fc.astype(jnp.float32) + b_fc.astype(jnp.float32)
    h = _exact_gelu(h)
    return h @ w_proj.astype(jnp.float32) + b_proj.astype(jnp.float32)


if __name__ == "__main__":
    # --- Test 1: toy module shapes (seq=8, hidden=32, intermediate=128), f32 ---
    S, H, I = 8, 32, 128
    k = jax.random.split(jax.random.PRNGKey(0), 5)
    x = jax.random.normal(k[0], (S, H), dtype=jnp.float32)
    # torch Linear(H, I).weight has shape [I, H]; we store its transpose [H, I].
    w_fc = jax.random.normal(k[1], (H, I), dtype=jnp.float32) * 0.05
    b_fc = jax.random.normal(k[2], (I,), dtype=jnp.float32) * 0.05
    w_proj = jax.random.normal(k[3], (I, H), dtype=jnp.float32) * 0.05
    b_proj = jax.random.normal(k[4], (H,), dtype=jnp.float32) * 0.05

    out = jax.block_until_ready(qwen_vl_mlp(x, w_fc, b_fc, w_proj, b_proj))
    ref = qwen_vl_mlp_ref(x, w_fc, b_fc, w_proj, b_proj)
    assert out.shape == (S, H)
    assert jnp.allclose(out, ref, atol=1e-5, rtol=1e-5), "f32 mismatch (toy shapes)"

    # --- Test 2: non-multiple seq length + multi-step grid on both axes, f32 ---
    S2, H2, I2 = 20, 128, 256
    k2 = jax.random.split(jax.random.PRNGKey(1), 5)
    x2 = jax.random.normal(k2[0], (S2, H2), dtype=jnp.float32)
    w_fc2 = jax.random.normal(k2[1], (H2, I2), dtype=jnp.float32) * 0.05
    b_fc2 = jax.random.normal(k2[2], (I2,), dtype=jnp.float32) * 0.05
    w_proj2 = jax.random.normal(k2[3], (I2, H2), dtype=jnp.float32) * 0.05
    b_proj2 = jax.random.normal(k2[4], (H2,), dtype=jnp.float32) * 0.05

    out2 = jax.block_until_ready(
        qwen_vl_mlp(x2, w_fc2, b_fc2, w_proj2, b_proj2, tile_m=16, tile_i=128))
    ref2 = qwen_vl_mlp_ref(x2, w_fc2, b_fc2, w_proj2, b_proj2)
    assert out2.shape == (S2, H2)
    assert jnp.allclose(out2, ref2, atol=1e-4, rtol=1e-4), "f32 mismatch (tiled path)"

    # --- Test 3: bf16 compute path (bf16 weights/activations, f32 accumulate) ---
    out3 = jax.block_until_ready(
        qwen_vl_mlp(x2, w_fc2, b_fc2, w_proj2, b_proj2,
                    tile_m=16, tile_i=128, compute_dtype=jnp.bfloat16))
    ref3 = qwen_vl_mlp_ref(x2.astype(jnp.bfloat16), w_fc2.astype(jnp.bfloat16),
                           b_fc2, w_proj2.astype(jnp.bfloat16), b_proj2)
    assert out3.dtype == jnp.bfloat16
    assert jnp.allclose(out3.astype(jnp.float32), ref3, atol=5e-2, rtol=5e-2), \
        "bf16 mismatch"

    print("KERNEL_OK")
</pallas_src>

<mosaic_0001>
module attributes {stable_mosaic.version = 11 : i64} {
  func.func @_mlp_kernel(%arg0: i32, %arg1: i32, %arg2: memref<8x32xf32, #tpu.memory_space<vmem>>, %arg3: memref<32x128xf32, #tpu.memory_space<vmem>>, %arg4: memref<1x128xf32, #tpu.memory_space<vmem>>, %arg5: memref<128x32xf32, #tpu.memory_space<vmem>>, %arg6: memref<1x32xf32, #tpu.memory_space<vmem>>, %arg7: memref<8x32xf32, #tpu.memory_space<vmem>>, %arg8: memref<8x32xf32, #tpu.memory_space<vmem>>) attributes {dimension_semantics = [#tpu.dimension_semantics<parallel>, #tpu.dimension_semantics<arbitrary>], iteration_bounds = array<i64: 1, 1>, scalar_prefetch = 0 : i64, scratch_operands = 1 : i64, tpu.core_type = #tpu.core_type<tc>, window_params = [{transform_indices = @transform_0, window_bounds = array<i64: 8, 32>}, {transform_indices = @transform_1, window_bounds = array<i64: 32, 128>}, {transform_indices = @transform_2, window_bounds = array<i64: 1, 128>}, {transform_indices = @transform_3, window_bounds = array<i64: 128, 32>}, {pipeline_mode = #tpu.pipeline_mode<synchronous>, transform_indices = @transform_4, window_bounds = array<i64: 1, 32>}, {transform_indices = @transform_5, window_bounds = array<i64: 8, 32>}]} {
    %c0_i32 = arith.constant 0 : i32
    %0 = arith.cmpi eq, %arg1, %c0_i32 : i32
    %1 = arith.extui %0 : i1 to i32
    %c0_i32_0 = arith.constant 0 : i32
    %2 = arith.cmpi ne, %1, %c0_i32_0 : i32
    scf.if %2 {
      %c0_18 = arith.constant 0 : index
      %c0_19 = arith.constant 0 : index
      %25 = vector.load %arg6[%c0_18, %c0_19] : memref<1x32xf32, #tpu.memory_space<vmem>>, vector<1x32xf32>
      %26 = vector.shape_cast %25 : vector<1x32xf32> to vector<1x32xf32>
      %27 = vector.broadcast %26 : vector<1x32xf32> to vector<8x32xf32>
      %c0_20 = arith.constant 0 : index
      %c0_21 = arith.constant 0 : index
      %28 = vector.load %arg8[%c0_20, %c0_21] : memref<8x32xf32, #tpu.memory_space<vmem>>, vector<8x32xf32>
      tpu.vector_store %arg8[%c0_20, %c0_21], %27 {strides = array<i32>} : memref<8x32xf32, #tpu.memory_space<vmem>>, vector<8x32xf32>,
    } else {
    }
    %c0 = arith.constant 0 : index
    %c0_1 = arith.constant 0 : index
    %3 = vector.load %arg2[%c0, %c0_1] : memref<8x32xf32, #tpu.memory_space<vmem>>, vector<8x32xf32>
    %c0_2 = arith.constant 0 : index
    %c0_3 = arith.constant 0 : index
    %4 = vector.load %arg3[%c0_2, %c0_3] : memref<32x128xf32, #tpu.memory_space<vmem>>, vector<32x128xf32>
    %cst = arith.constant dense<0.000000e+00> : vector<8x128xf32>
    %5 = tpu.matmul %3, %4, %cst {dimension_numbers = #tpu.dot_dimension_numbers<[1], [0], [0], [1], [0, 0, 1, 1], [], []>} : vector<8x32xf32>, vector<32x128xf32>, vector<8x128xf32> -> vector<8x128xf32>
    %c0_4 = arith.constant 0 : index
    %c0_5 = arith.constant 0 : index
    %6 = vector.load %arg4[%c0_4, %c0_5] : memref<1x128xf32, #tpu.memory_space<vmem>>, vector<1x128xf32>
    %7 = vector.broadcast %6 : vector<1x128xf32> to vector<8x128xf32>
    %8 = arith.addf %5, %7 : vector<8x128xf32>
    %cst_6 = arith.constant 5.000000e-01 : f32
    %9 = vector.broadcast %cst_6 : f32 to vector<8x128xf32>
    %10 = arith.mulf %9, %8 : vector<8x128xf32>
    %cst_7 = arith.constant 0.707106769 : f32
    %11 = vector.broadcast %cst_7 : f32 to vector<8x128xf32>
    %12 = arith.mulf %8, %11 : vector<8x128xf32>
    %13 = math.erf %12 : vector<8x128xf32>
    %cst_8 = arith.constant 1.000000e+00 : f32
    %14 = vector.broadcast %cst_8 : f32 to vector<8x128xf32>
    %15 = arith.addf %14, %13 : vector<8x128xf32>
    %16 = arith.mulf %10, %15 : vector<8x128xf32>
    %c0_9 = arith.constant 0 : index
    %c0_10 = arith.constant 0 : index
    %17 = vector.load %arg8[%c0_9, %c0_10] : memref<8x32xf32, #tpu.memory_space<vmem>>, vector<8x32xf32>
    %c0_11 = arith.constant 0 : index
    %c0_12 = arith.constant 0 : index
    %18 = vector.load %arg5[%c0_11, %c0_12] : memref<128x32xf32, #tpu.memory_space<vmem>>, vector<128x32xf32>
    %cst_13 = arith.constant dense<0.000000e+00> : vector<8x32xf32>
    %19 = tpu.matmul %16, %18, %cst_13 {dimension_numbers = #tpu.dot_dimension_numbers<[1], [0], [0], [1], [0, 0, 1, 1], [], []>} : vector<8x128xf32>, vector<128x32xf32>, vector<8x32xf32> -> vector<8x32xf32>
    %20 = arith.addf %17, %19 : vector<8x32xf32>
    %c0_14 = arith.constant 0 : index
    %c0_15 = arith.constant 0 : index
    %21 = vector.load %arg8[%c0_14, %c0_15] : memref<8x32xf32, #tpu.memory_space<vmem>>, vector<8x32xf32>
    tpu.vector_store %arg8[%c0_14, %c0_15], %20 {strides = array<i32>} : memref<8x32xf32, #tpu.memory_space<vmem>>, vector<8x32xf32>,
    %c0_i32_16 = arith.constant 0 : i32
    %22 = arith.cmpi eq, %arg1, %c0_i32_16 : i32
    %23 = arith.extui %22 : i1 to i32
    %c0_i32_17 = arith.constant 0 : i32
    %24 = arith.cmpi ne, %23, %c0_i32_17 : i32
    scf.if %24 {
      %c0_18 = arith.constant 0 : index
      %c0_19 = arith.constant 0 : index
      %25 = vector.load %arg8[%c0_18, %c0_19] : memref<8x32xf32, #tpu.memory_space<vmem>>, vector<8x32xf32>
      %c0_20 = arith.constant 0 : index
      %c0_21 = arith.constant 0 : index
      %26 = vector.load %arg7[%c0_20, %c0_21] : memref<8x32xf32, #tpu.memory_space<vmem>>, vector<8x32xf32>
      tpu.vector_store %arg7[%c0_20, %c0_21], %25 {strides = array<i32>} : memref<8x32xf32, #tpu.memory_space<vmem>>, vector<8x32xf32>,
    } else {
    }
    return
  }
  func.func @transform_0(%arg0: i32, %arg1: i32) -> (i32, i32) {
    %c0_i32 = arith.constant 0 : i32
    %c0_i32_0 = arith.constant 0 : i32
    return %arg0, %c0_i32 : i32, i32
  }
  func.func @transform_1(%arg0: i32, %arg1: i32) -> (i32, i32) {
    %c0_i32 = arith.constant 0 : i32
    %c0_i32_0 = arith.constant 0 : i32
    return %c0_i32, %arg1 : i32, i32
  }
  func.func @transform_2(%arg0: i32, %arg1: i32) -> (i32, i32) {
    %c0_i32 = arith.constant 0 : i32
    %c0_i32_0 = arith.constant 0 : i32
    return %c0_i32, %arg1 : i32, i32
  }
  func.func @transform_3(%arg0: i32, %arg1: i32) -> (i32, i32) {
    %c0_i32 = arith.constant 0 : i32
    %c0_i32_0 = arith.constant 0 : i32
    return %arg1, %c0_i32 : i32, i32
  }
  func.func @transform_4(%arg0: i32, %arg1: i32) -> (i32, i32) {
    %c0_i32 = arith.constant 0 : i32
    %c0_i32_0 = arith.constant 0 : i32
    %c0_i32_1 = arith.constant 0 : i32
    return %c0_i32, %c0_i32_0 : i32, i32
  }
  func.func @transform_5(%arg0: i32, %arg1: i32) -> (i32, i32) {
    %c0_i32 = arith.constant 0 : i32
    %c0_i32_0 = arith.constant 0 : i32
    return %arg0, %c0_i32 : i32, i32
  }
}

</mosaic_0001>

<bundles_post_ra>
// kernel: tpu_custom_call.1
= control target key start
LH: loop header
LB: loop body
LE: loop exit
PB: predicated region body
PF: predicated region fallthrough
CT: control target
= control target key end

     0   :  { %vm29_vm0 = vcmask 261120   ;;  %s308_s0 = inlined_call_operand.vmem [shape: f32[8,32], index: 0, kind: input, shape index: {}]   ;;  %s309_s1 = inlined_call_operand.vmem [shape: f32[32,128], index: 1, kind: input, shape index: {}]   ;;  %s310_s2 = inlined_call_operand.vmem [shape: f32[1,128], index: 2, kind: input, shape index: {}]   ;;  %s311_s3 = inlined_call_operand.vmem [shape: f32[128,32], index: 3, kind: input, shape index: {}]   ;;  %s312_s4 = inlined_call_operand.vmem [shape: f32[1,32], index: 4, kind: input, shape index: {}]   ;;  %s313_s5 = inlined_call_operand.hbm [shape: f32[8,32], index: 5, kind: output, shape index: {}]  }
   0x1   :  { %v35_v0 = vld [vmem:[%s309_s1 + $0x18] sm:$0xff]  ;;  %v34_v1 = vld [vmem:[%s309_s1 + $0x10] sm:$0xff]  ;;  %v171_v2 = vld [vmem:[%s312_s4] ss:$0 sm:$0xff] }
   0x2   :  { %56 = vmatpush.msra.mxu0 %v35_v0  ;;  %v33_v3 = vld [vmem:[%s309_s1 + $0x8] sm:$0xff]  ;;  %30 = vst.msk [vmem:[#allocation2] sm:$0xff] %vm29_vm0, %v171_v2 }
   0x4   :  { %57 = vmatpush.msra.mxu0 %v34_v1 }
   0x5   :  { %10 = vsyncpa [#allocation4], 0  ;;  %v32_v4 = vld [vmem:[%s309_s1] sm:$0xff]  ;;  %v124_v6 = vld [vmem:[%s311_s3 + $0x78] sm:$0xff]  ;;  %s159_s10 = sshll.u32 %s313_s5, 4  ;;  %s160_s10 = int_to_ptr.hbm [resolvable:$true] %s159_s10 }
   0x6   :  { %58 = vmatpush.msra.mxu0 %v33_v3  ;;  %v31_v5 = vld [vmem:[%s308_s0] sm:$0xff]  ;;  %125 = vmatpush.msra.mxu1 %v124_v6  ;;  %v123_v7 = vld [vmem:[%s311_s3 + $0x70] sm:$0xff]  ;;  %v122_v8 = vld [vmem:[%s311_s3 + $0x68] sm:$0xff] }
   0x7   :  { %v121_v9 = vld [vmem:[%s311_s3 + $0x60] sm:$0xff]  ;;  %v120_v11 = vld [vmem:[%s311_s3 + $0x58] sm:$0xff]  ;;  %v119_v12 = vld [vmem:[%s311_s3 + $0x50] sm:$0xff] }
   0x8   :  { %59 = vmatpush.msra.mxu0 %v32_v4  ;;  %126 = vmatpush.msra.mxu1 %v123_v7  ;;  %v172_v10 = vld [vmem:[%s310_s2] ss:$0 sm:$0xff]  ;;  %v118_v14 = vld [vmem:[%s311_s3 + $0x48] sm:$0xff]  ;;  %v116_v18 = vld [vmem:[%s311_s3 + $0x38] sm:$0xff] }
   0x9   :  { %168 = vmatmul.msk.f32.vlgmr.msra.gmra.mxu0 %vm29_vm0, %v31_v5  ;;  %v117_v16 = vld [vmem:[%s311_s3 + $0x40] sm:$0xff]  ;;  %v115_v20 = vld [vmem:[%s311_s3 + $0x30] sm:$0xff]  ;;  %v114_v22 = vld [vmem:[%s311_s3 + $0x28] sm:$0xff] }
   0xa   :  { %127 = vmatpush.msra.mxu1 %v122_v8  ;;  %v113_v25 = vld [vmem:[%s311_s3 + $0x20] sm:$0xff]  ;;  %v112_v28 = vld [vmem:[%s311_s3 + $0x18] sm:$0xff]  ;;  %v111_v31 = vld [vmem:[%s311_s3 + $0x10] sm:$0xff] }
   0xb   :  { %v110_v34 = vld [vmem:[%s311_s3 + $0x8] sm:$0xff]  ;;  %v109_v36 = vld [vmem:[%s311_s3] sm:$0xff]  ;;  %s201_s3 = smov [#allocation3]  }
   0xc   :  { %128 = vmatpush.msra.mxu1 %v121_v9  ;;  %v108_v0 = vld [vmem:[#allocation2] sm:$0xff]  ;;  %s157_s1 = sshll.u32 %s201_s3, 4  ;;  %s158_s1 = int_to_ptr.vmem [resolvable:$true] %s157_s1 }
   0xe   :  { %129 = vmatpush.msra.mxu1 %v120_v11 }
  0x10   :  { %130 = vmatpush.msra.mxu1 %v119_v12 }
  0x12   :  { %131 = vmatpush.msra.mxu1 %v118_v14 }
  0x14   :  { %132 = vmatpush.msra.mxu1 %v117_v16 }
  0x16   :  { %133 = vmatpush.msra.mxu1 %v116_v18 }
  0x18   :  { %134 = vmatpush.msra.mxu1 %v115_v20 }
  0x1a   :  { %135 = vmatpush.msra.mxu1 %v114_v22 }
  0x1c   :  { %136 = vmatpush.msra.mxu1 %v113_v25 }
  0x1e   :  { %137 = vmatpush.msra.mxu1 %v112_v28 }
  0x20   :  { %138 = vmatpush.msra.mxu1 %v111_v31 }
  0x22   :  { %139 = vmatpush.msra.mxu1 %v110_v34 }
  0x24   :  { %140 = vmatpush.msra.mxu1 %v109_v36 }
  0x86   :  { %v61_v13 = vpop.f32.mrf.mxu0 }
  0x87   :  { %v62_v15 = vadd.f32 %v172_v10, %v61_v13 }
  0x89   :  { %v65_v17 = vmul.f32 0.70710677, %v62_v15  ;;  %v64_v61 = vmul.f32 0.5, %v62_v15 }
  0x8b   :  { %v66_v19 = vmul.f32 %v65_v17, %v65_v17 }
  0x8d   :  { %v67_v21 = vmin.f32 %v66_v19, 16.0 }
  0x8f   :  { %v68_v23 = vmul.f32 2.1237322e-06, %v67_v21  ;;  %v79_v24 = vmul.f32 3.8918573e-05, %v67_v21 }
  0x91   :  { %v69_v26 = vadd.f32 0.00028619796, %v68_v23  ;;  %v80_v27 = vadd.f32 0.001143296, %v79_v24 }
  0x93   :  { %v70_v29 = vmul.f32 %v69_v26, %v67_v21  ;;  %v81_v30 = vmul.f32 %v80_v27, %v67_v21 }
  0x95   :  { %v82_v32 = vadd.f32 0.014752088, %v81_v30  ;;  %v71_v33 = vadd.f32 0.0036580483, %v70_v29 }
  0x97   :  { %v83_v35 = vmul.f32 %v82_v32, %v67_v21  ;;  %v72_v38 = vmul.f32 %v71_v33, %v67_v21 }
  0x99   :  { %v84_v37 = vadd.f32 0.112945676, %v83_v35  ;;  %v73_v41 = vadd.f32 0.05243302, %v72_v38 }
  0x9b   :  { %v85_v39 = vmul.f32 %v84_v37, %v67_v21  ;;  %v74_v44 = vmul.f32 %v73_v41, %v67_v21 }
  0x9d   :  { %v86_v40 = vadd.f32 0.4994258, %v85_v39  ;;  %v75_v45 = vadd.f32 0.18741608, %v74_v44 }
  0x9f   :  { %v87_v42 = vmul.f32 %v86_v40, %v67_v21  ;;  %v76_v47 = vmul.f32 %v75_v45, %v67_v21 }
  0xa1   :  { %v88_v43 = vadd.f32 1.0, %v87_v42  ;;  %v77_v51 = vadd.f32 1.1283791, %v76_v47 }
  0xa3   :  { %173 = vrcp.f32 %v88_v43  ;;  %v100_v50 = vand.u32 2147483648, %v88_v43  ;;  %v98_v53 = vand.u32 2147483647, %v88_v43  ;;  %vm94_vm2 = vweird.f32 %v88_v43 }
  0xa4   :  { %v78_v56 = vmul.f32 %v77_v51, %v65_v17 }
  0xa5   :  { %v101_v55 = vor.u32 1.1754944e-38, %v100_v50  ;;  %vm99_vm4 = vcmp.eq.f32.partialorder %v98_v53, 8.507059e+37 }
  0xa9   :  { %v174_v46 = vpop.eup %173 }
  0xaa   :  { %v90_v48 = vmul.f32 %v174_v46, %v88_v43  ;;  %vm95_vm1 = vweird.f32 %v174_v46 }
  0xab   :  { %vm96_vm3 = vmor %vm94_vm2, %vm95_vm1 }
  0xac   :  { %v91_v49 = vsub.f32 1.0, %v90_v48 }
  0xae   :  { %v92_v52 = vmul.f32 %v174_v46, %v91_v49 }
  0xb0   :  { %v93_v54 = vadd.f32 %v174_v46, %v92_v52 }
  0xb2   :  { %v97_v57 = vsel %vm96_vm3, %v174_v46, %v93_v54 }
  0xb3   :  { %v102_v58 = vsel %vm99_vm4, %v101_v55, %v97_v57 }
  0xb4   :  { %v103_v59 = vmul.f32 %v102_v58, %v78_v56 }
  0xb6   :  { %v169_v60 = vclamps-f32 %v103_v59, 1.0 }
  0xb8   :  { %v106_v62 = vadd.f32 1.0, %v169_v60 }
  0xba   :  { %v107_v63 = vmul.f32 %v106_v62, %v64_v61 }
  0xbc   :  { %141 = vmatmul.f32.vlgmr.msra.gmra.mxu1 %v107_v63 }
 0x139   :  { %v142_v1 = vpop.f32.mrf.mxu1 }
 0x13a   :  { %v145_v2 = vadd.f32 %v142_v1, %v108_v0 }
 0x13c   :  { %146 = vst.msk [vmem:[#allocation2] sm:$0xff] %vm29_vm0, %v145_v2 }
 0x143   :  { %v150_v3 = vld [vmem:[#allocation2] sm:$0xff] }
 0x144   :  { %151 = vst.msk [vmem:[#allocation3] sm:$0xff] %vm29_vm0, %v150_v3 }
 0x145   :  { %162 = dma.vmem_to_hbm [thread:$0]  %s158_s1, 128, %s160_s10, [#allocation4]  }
 0x146   :  { %199 = dma.done.wait [#allocation4], 128  }
 0x147   :  { %200 = vsyncadd [#allocation4], 4294967168 }
 0x148   :  { %167 = vsyncpa [#allocation4], 1 }

</bundles_post_ra>
